<compile_context>
chip_gen: v7x
topology: tpu7x:2x2x1
jax: 0.10.0
libtpu: 0.0.40
codegen_flags: <defaults>
</compile_context>

<pallas_src>
import math
import functools

import jax
import jax.numpy as jnp
from jax import lax
from jax.experimental import pallas as pl
from jax.experimental.pallas import tpu as pltpu


def _bert_attention_kernel(x_ref, wqkv_ref, bqkv_ref, wo_ref, bo_ref,
                           gamma_ref, beta_ref, out_ref,
                           acc_ref, xb_ref, *, eps):
    h = pl.program_id(1)
    num_heads = pl.num_programs(1)
    d = wqkv_ref.shape[-1] // 3

    # Per-batch init (head axis is the inner, sequential axis).
    @pl.when(h == 0)
    def _init():
        acc_ref[...] = jnp.zeros_like(acc_ref)
        xb_ref[...] = x_ref[0].astype(jnp.bfloat16)   # cast activations once per batch

    xb = xb_ref[...]                                   # [S, H] bf16

    # Fused Q|K|V projection for this head: one MXU matmul, N = 3*head_dim.
    # (1/sqrt(d) is already folded into the Q columns / bias on the host.)
    qkv = jnp.dot(xb, wqkv_ref[0], preferred_element_type=jnp.float32) + bqkv_ref[0]
    qh = qkv[:, 0:d].astype(jnp.bfloat16)              # [S, d]
    kh = qkv[:, d:2 * d].astype(jnp.bfloat16)          # [S, d]
    vh = qkv[:, 2 * d:3 * d].astype(jnp.bfloat16)      # [S, d]

    # scores = qh @ kh^T  — contract last dims of both (no explicit XLU transpose).
    scores = lax.dot_general(qh, kh, (((1,), (1,)), ((), ())),
                             preferred_element_type=jnp.float32)       # [S, S] f32

    # Max-stabilized softmax in f32; reciprocal goes to the EUP slot.
    scores = scores - jnp.max(scores, axis=-1, keepdims=True)
    probs = jnp.exp(scores)
    probs = probs * pl.reciprocal(jnp.sum(probs, axis=-1, keepdims=True), approx=True)

    # Context for this head, then accumulate its slice of the output projection.
    ctx_h = jnp.dot(probs.astype(jnp.bfloat16), vh,
                    preferred_element_type=jnp.float32)                # [S, d]
    acc_ref[...] += jnp.dot(ctx_h.astype(jnp.bfloat16), wo_ref[0],
                            preferred_element_type=jnp.float32)        # [S, H]

    # Finalize: output bias + residual + LayerNorm (all f32), write the batch tile.
    @pl.when(h == num_heads - 1)
    def _finalize():
        y = acc_ref[...] + bo_ref[0] + x_ref[0]
        mean = jnp.mean(y, axis=-1, keepdims=True)
        var = jnp.mean((y - mean) ** 2, axis=-1, keepdims=True)
        y_norm = (y - mean) * lax.rsqrt(var + eps)
        out_ref[0] = (y_norm * gamma_ref[0] + beta_ref[0]).astype(out_ref.dtype)


def bert_attention(x, params, *, num_heads, eps=1e-12):
    """x: [B, S, H] float32. params: dict of weights (Linear weights as [in, out])."""
    B, S, H = x.shape
    d = H // num_heads
    scale = 1.0 / math.sqrt(d)

    # --- Host-side packing -------------------------------------------------
    # Fold the softmax 1/sqrt(d) scale into the query weight & bias.
    wq = params["wq"] * scale
    bq = params["bq"] * scale

    def split_heads_cols(w):          # [H, H] -> (NH, H, d), head-major column split
        return w.reshape(H, num_heads, d).transpose(1, 0, 2)

    # Packed per-head fused weight: (NH, H, 3d) = [Wq_h | Wk_h | Wv_h], bf16 MXU operands.
    wqkv = jnp.concatenate(
        [split_heads_cols(wq), split_heads_cols(params["wk"]), split_heads_cols(params["wv"])],
        axis=-1).astype(jnp.bfloat16)
    bqkv = jnp.concatenate(
        [bq.reshape(num_heads, 1, d),
         params["bk"].reshape(num_heads, 1, d),
         params["bv"].reshape(num_heads, 1, d)], axis=-1).astype(jnp.float32)

    # Output projection split into per-head row blocks: (NH, d, H), bf16.
    wo = params["wo"].reshape(num_heads, d, H).astype(jnp.bfloat16)
    bo = params["bo"].reshape(1, H).astype(jnp.float32)
    gamma = params["ln_gamma"].reshape(1, H).astype(jnp.float32)
    beta = params["ln_beta"].reshape(1, H).astype(jnp.float32)

    kernel = functools.partial(_bert_attention_kernel, eps=eps)

    return pl.pallas_call(
        kernel,
        out_shape=jax.ShapeDtypeStruct((B, S, H), x.dtype),
        grid_spec=pltpu.PrefetchScalarGridSpec(
            num_scalar_prefetch=0,
            grid=(B, num_heads),
            in_specs=[
                pl.BlockSpec((1, S, H), lambda b, h: (b, 0, 0)),        # x (resident per batch)
                pl.BlockSpec((1, H, 3 * d), lambda b, h: (h, 0, 0)),    # fused Wqkv, per head
                pl.BlockSpec((1, 1, 3 * d), lambda b, h: (h, 0, 0)),    # fused bqkv, per head
                pl.BlockSpec((1, d, H), lambda b, h: (h, 0, 0)),        # Wo row block, per head
                pl.BlockSpec((1, H), lambda b, h: (0, 0)),              # bo
                pl.BlockSpec((1, H), lambda b, h: (0, 0)),              # ln gamma
                pl.BlockSpec((1, H), lambda b, h: (0, 0)),              # ln beta
            ],
            out_specs=pl.BlockSpec((1, S, H), lambda b, h: (b, 0, 0)),
            scratch_shapes=[
                pltpu.VMEM((S, H), jnp.float32),    # output-projection accumulator
                pltpu.VMEM((S, H), jnp.bfloat16),   # bf16 copy of x for matmul operands
            ],
        ),
        compiler_params=pltpu.CompilerParams(
            dimension_semantics=("parallel", "arbitrary"),
            vmem_limit_bytes=64 * 1024 * 1024),
    )(x, wqkv, bqkv, wo, bo, gamma, beta)


def _reference(x, params, *, num_heads, eps=1e-12):
    """Plain-JAX f32 reference of BertAttention forward (eval mode)."""
    B, S, H = x.shape
    d = H // num_heads

    def lin(a, w, b):
        return a @ w + b

    q = lin(x, params["wq"], params["bq"]).reshape(B, S, num_heads, d).transpose(0, 2, 1, 3)
    k = lin(x, params["wk"], params["bk"]).reshape(B, S, num_heads, d).transpose(0, 2, 1, 3)
    v = lin(x, params["wv"], params["bv"]).reshape(B, S, num_heads, d).transpose(0, 2, 1, 3)

    scores = jnp.einsum("bhqd,bhkd->bhqk", q, k) / math.sqrt(d)
    probs = jax.nn.softmax(scores, axis=-1)
    ctx = jnp.einsum("bhqk,bhkd->bhqd", probs, v).transpose(0, 2, 1, 3).reshape(B, S, H)

    y = lin(ctx, params["wo"], params["bo"]) + x
    mean = jnp.mean(y, axis=-1, keepdims=True)
    var = jnp.mean((y - mean) ** 2, axis=-1, keepdims=True)
    return (y - mean) / jnp.sqrt(var + eps) * params["ln_gamma"] + params["ln_beta"]


if __name__ == "__main__":
    # Small BERT-like config: batch=2, seq=8, hidden=32, heads=4 (head_dim=8).
    B, S, H, NH = 2, 8, 32, 4
    key = jax.random.PRNGKey(0)
    ks = jax.random.split(key, 10)

    wscale = 0.05
    params = {
        "wq": wscale * jax.random.normal(ks[0], (H, H), jnp.float32),
        "wk": wscale * jax.random.normal(ks[1], (H, H), jnp.float32),
        "wv": wscale * jax.random.normal(ks[2], (H, H), jnp.float32),
        "wo": wscale * jax.random.normal(ks[3], (H, H), jnp.float32),
        "bq": wscale * jax.random.normal(ks[4], (H,), jnp.float32),
        "bk": wscale * jax.random.normal(ks[5], (H,), jnp.float32),
        "bv": wscale * jax.random.normal(ks[6], (H,), jnp.float32),
        "bo": wscale * jax.random.normal(ks[7], (H,), jnp.float32),
        "ln_gamma": jnp.ones((H,), jnp.float32),
        "ln_beta": jnp.zeros((H,), jnp.float32),
    }

    x = jax.random.normal(ks[8], (B, S, H), jnp.float32)

    out = bert_attention(x, params, num_heads=NH)
    out = jax.block_until_ready(out)

    ref = _reference(x, params, num_heads=NH)
    assert out.shape == (B, S, H)
    # bf16 MXU operands (f32 accumulation) + approx reciprocal: relaxed tolerance.
    err = jnp.max(jnp.abs(out - ref))
    assert jnp.allclose(out, ref, atol=2e-2, rtol=2e-2), f"max abs err {err}"

    print("KERNEL_OK")
</pallas_src>

<mosaic_0001>
module attributes {stable_mosaic.version = 11 : i64} {
  func.func @_bert_attention_kernel(%arg0: i32, %arg1: i32, %arg2: memref<1x8x32xf32, #tpu.memory_space<vmem>>, %arg3: memref<1x32x24xbf16, #tpu.memory_space<vmem>>, %arg4: memref<1x1x24xf32, #tpu.memory_space<vmem>>, %arg5: memref<1x8x32xbf16, #tpu.memory_space<vmem>>, %arg6: memref<1x32xf32, #tpu.memory_space<vmem>>, %arg7: memref<1x32xf32, #tpu.memory_space<vmem>>, %arg8: memref<1x32xf32, #tpu.memory_space<vmem>>, %arg9: memref<1x8x32xf32, #tpu.memory_space<vmem>>, %arg10: memref<8x32xf32, #tpu.memory_space<vmem>>, %arg11: memref<8x32xbf16, #tpu.memory_space<vmem>>) attributes {dimension_semantics = [#tpu.dimension_semantics<parallel>, #tpu.dimension_semantics<arbitrary>], iteration_bounds = array<i64: 2, 4>, scalar_prefetch = 0 : i64, scratch_operands = 2 : i64, tpu.core_type = #tpu.core_type<tc>, window_params = [{transform_indices = @transform_0, window_bounds = array<i64: 1, 8, 32>}, {transform_indices = @transform_1, window_bounds = array<i64: 1, 32, 24>}, {transform_indices = @transform_2, window_bounds = array<i64: 1, 1, 24>}, {transform_indices = @transform_3, window_bounds = array<i64: 1, 8, 32>}, {pipeline_mode = #tpu.pipeline_mode<synchronous>, transform_indices = @transform_4, window_bounds = array<i64: 1, 32>}, {pipeline_mode = #tpu.pipeline_mode<synchronous>, transform_indices = @transform_5, window_bounds = array<i64: 1, 32>}, {pipeline_mode = #tpu.pipeline_mode<synchronous>, transform_indices = @transform_6, window_bounds = array<i64: 1, 32>}, {transform_indices = @transform_7, window_bounds = array<i64: 1, 8, 32>}]} {
    %c0_i32 = arith.constant 0 : i32
    %0 = arith.cmpi eq, %arg1, %c0_i32 : i32
    %1 = arith.extui %0 : i1 to i32
    %c0_i32_0 = arith.constant 0 : i32
    %2 = arith.cmpi ne, %1, %c0_i32_0 : i32
    scf.if %2 {
      %cst_21 = arith.constant 0.000000e+00 : f32
      %40 = vector.broadcast %cst_21 : f32 to vector<8x32xf32>
      %c0_22 = arith.constant 0 : index
      %c0_23 = arith.constant 0 : index
      %41 = vector.load %arg10[%c0_22, %c0_23] : memref<8x32xf32, #tpu.memory_space<vmem>>, vector<8x32xf32>
      tpu.vector_store %arg10[%c0_22, %c0_23], %40 {strides = array<i32>} : memref<8x32xf32, #tpu.memory_space<vmem>>, vector<8x32xf32>,
      %c0_24 = arith.constant 0 : index
      %c0_25 = arith.constant 0 : index
      %c0_26 = arith.constant 0 : index
      %42 = vector.load %arg2[%c0_24, %c0_25, %c0_26] : memref<1x8x32xf32, #tpu.memory_space<vmem>>, vector<1x8x32xf32>
      %43 = vector.shape_cast %42 : vector<1x8x32xf32> to vector<8x32xf32>
      %44 = arith.truncf %43 : vector<8x32xf32> to vector<8x32xbf16>
      %c0_27 = arith.constant 0 : index
      %c0_28 = arith.constant 0 : index
      %45 = vector.load %arg11[%c0_27, %c0_28] : memref<8x32xbf16, #tpu.memory_space<vmem>>, vector<8x32xbf16>
      tpu.vector_store %arg11[%c0_27, %c0_28], %44 {strides = array<i32>} : memref<8x32xbf16, #tpu.memory_space<vmem>>, vector<8x32xbf16>,
    } else {
    }
    %c0 = arith.constant 0 : index
    %c0_1 = arith.constant 0 : index
    %3 = vector.load %arg11[%c0, %c0_1] : memref<8x32xbf16, #tpu.memory_space<vmem>>, vector<8x32xbf16>
    %c0_2 = arith.constant 0 : index
    %c0_3 = arith.constant 0 : index
    %c0_4 = arith.constant 0 : index
    %4 = vector.load %arg3[%c0_2, %c0_3, %c0_4] : memref<1x32x24xbf16, #tpu.memory_space<vmem>>, vector<1x32x24xbf16>
    %5 = vector.shape_cast %4 : vector<1x32x24xbf16> to vector<32x24xbf16>
    %cst = arith.constant dense<0.000000e+00> : vector<8x24xf32>
    %6 = tpu.matmul %3, %5, %cst {dimension_numbers = #tpu.dot_dimension_numbers<[1], [0], [0], [1], [0, 0, 1, 1], [], []>} : vector<8x32xbf16>, vector<32x24xbf16>, vector<8x24xf32> -> vector<8x24xf32>
    %c0_5 = arith.constant 0 : index
    %c0_6 = arith.constant 0 : index
    %c0_7 = arith.constant 0 : index
    %7 = vector.load %arg4[%c0_5, %c0_6, %c0_7] : memref<1x1x24xf32, #tpu.memory_space<vmem>>, vector<1x1x24xf32>
    %8 = vector.shape_cast %7 : vector<1x1x24xf32> to vector<1x24xf32>
    %9 = vector.broadcast %8 : vector<1x24xf32> to vector<8x24xf32>
    %10 = arith.addf %6, %9 : vector<8x24xf32>
    %11 = vector.extract_strided_slice %10 {offsets = [0, 0], sizes = [8, 8], strides = [1, 1]} : vector<8x24xf32> to vector<8x8xf32>
    %12 = arith.truncf %11 : vector<8x8xf32> to vector<8x8xbf16>
    %13 = vector.extract_strided_slice %10 {offsets = [0, 8], sizes = [8, 8], strides = [1, 1]} : vector<8x24xf32> to vector<8x8xf32>
    %14 = arith.truncf %13 : vector<8x8xf32> to vector<8x8xbf16>
    %15 = vector.extract_strided_slice %10 {offsets = [0, 16], sizes = [8, 8], strides = [1, 1]} : vector<8x24xf32> to vector<8x8xf32>
    %16 = arith.truncf %15 : vector<8x8xf32> to vector<8x8xbf16>
    %cst_8 = arith.constant dense<0.000000e+00> : vector<8x8xf32>
    %17 = tpu.matmul %12, %14, %cst_8 {dimension_numbers = #tpu.dot_dimension_numbers<[1], [1], [0], [0], [0, 0, 1, 0], [], []>} : vector<8x8xbf16>, vector<8x8xbf16>, vector<8x8xf32> -> vector<8x8xf32>
    %cst_9 = arith.constant dense<0xFF800000> : vector<8xf32>
    %18 = vector.multi_reduction <maximumf>, %17, %cst_9 [1] : vector<8x8xf32> to vector<8xf32>
    %19 = vector.shape_cast %18 : vector<8xf32> to vector<8x1xf32>
    %20 = vector.broadcast %19 : vector<8x1xf32> to vector<8x8xf32>
    %21 = arith.subf %17, %20 : vector<8x8xf32>
    %22 = math.exp %21 : vector<8x8xf32>
    %cst_10 = arith.constant dense<0.000000e+00> : vector<8xf32>
    %23 = vector.multi_reduction <add>, %22, %cst_10 [1] : vector<8x8xf32> to vector<8xf32>
    %24 = vector.shape_cast %23 : vector<8xf32> to vector<8x1xf32>
    %25 = tpu.reciprocal %24 {approx = true} : vector<8x1xf32> -> vector<8x1xf32>
    %26 = vector.broadcast %25 : vector<8x1xf32> to vector<8x8xf32>
    %27 = arith.mulf %22, %26 : vector<8x8xf32>
    %28 = arith.truncf %27 : vector<8x8xf32> to vector<8x8xbf16>
    %cst_11 = arith.constant dense<0.000000e+00> : vector<8x8xf32>
    %29 = tpu.matmul %28, %16, %cst_11 {dimension_numbers = #tpu.dot_dimension_numbers<[1], [0], [0], [1], [0, 0, 1, 1], [], []>} : vector<8x8xbf16>, vector<8x8xbf16>, vector<8x8xf32> -> vector<8x8xf32>
    %c0_12 = arith.constant 0 : index
    %c0_13 = arith.constant 0 : index
    %30 = vector.load %arg10[%c0_12, %c0_13] : memref<8x32xf32, #tpu.memory_space<vmem>>, vector<8x32xf32>
    %31 = arith.truncf %29 : vector<8x8xf32> to vector<8x8xbf16>
    %c0_14 = arith.constant 0 : index
    %c0_15 = arith.constant 0 : index
    %c0_16 = arith.constant 0 : index
    %32 = vector.load %arg5[%c0_14, %c0_15, %c0_16] : memref<1x8x32xbf16, #tpu.memory_space<vmem>>, vector<1x8x32xbf16>
    %33 = vector.shape_cast %32 : vector<1x8x32xbf16> to vector<8x32xbf16>
    %cst_17 = arith.constant dense<0.000000e+00> : vector<8x32xf32>
    %34 = tpu.matmul %31, %33, %cst_17 {dimension_numbers = #tpu.dot_dimension_numbers<[1], [0], [0], [1], [0, 0, 1, 1], [], []>} : vector<8x8xbf16>, vector<8x32xbf16>, vector<8x32xf32> -> vector<8x32xf32>
    %35 = arith.addf %30, %34 : vector<8x32xf32>
    %c0_18 = arith.constant 0 : index
    %c0_19 = arith.constant 0 : index
    %36 = vector.load %arg10[%c0_18, %c0_19] : memref<8x32xf32, #tpu.memory_space<vmem>>, vector<8x32xf32>
    tpu.vector_store %arg10[%c0_18, %c0_19], %35 {strides = array<i32>} : memref<8x32xf32, #tpu.memory_space<vmem>>, vector<8x32xf32>,
    %c3_i32 = arith.constant 3 : i32
    %37 = arith.cmpi eq, %arg1, %c3_i32 : i32
    %38 = arith.extui %37 : i1 to i32
    %c0_i32_20 = arith.constant 0 : i32
    %39 = arith.cmpi ne, %38, %c0_i32_20 : i32
    scf.if %39 {
      %c0_21 = arith.constant 0 : index
      %c0_22 = arith.constant 0 : index
      %40 = vector.load %arg10[%c0_21, %c0_22] : memref<8x32xf32, #tpu.memory_space<vmem>>, vector<8x32xf32>
      %c0_23 = arith.constant 0 : index
      %c0_24 = arith.constant 0 : index
      %41 = vector.load %arg6[%c0_23, %c0_24] : memref<1x32xf32, #tpu.memory_space<vmem>>, vector<1x32xf32>
      %42 = vector.shape_cast %41 : vector<1x32xf32> to vector<32xf32>
      %43 = vector.shape_cast %42 : vector<32xf32> to vector<1x32xf32>
      %44 = vector.broadcast %43 : vector<1x32xf32> to vector<8x32xf32>
      %45 = arith.addf %40, %44 : vector<8x32xf32>
      %c0_25 = arith.constant 0 : index
      %c0_26 = arith.constant 0 : index
      %c0_27 = arith.constant 0 : index
      %46 = vector.load %arg2[%c0_25, %c0_26, %c0_27] : memref<1x8x32xf32, #tpu.memory_space<vmem>>, vector<1x8x32xf32>
      %47 = vector.shape_cast %46 : vector<1x8x32xf32> to vector<8x32xf32>
      %48 = arith.addf %45, %47 : vector<8x32xf32>
      %cst_28 = arith.constant dense<0.000000e+00> : vector<8xf32>
      %49 = vector.multi_reduction <add>, %48, %cst_28 [1] : vector<8x32xf32> to vector<8xf32>
      %50 = vector.shape_cast %49 : vector<8xf32> to vector<8x1xf32>
      %cst_29 = arith.constant 3.200000e+01 : f32
      %51 = vector.broadcast %cst_29 : f32 to vector<8x1xf32>
      %52 = arith.divf %50, %51 : vector<8x1xf32>
      %53 = vector.broadcast %52 : vector<8x1xf32> to vector<8x32xf32>
      %54 = arith.subf %48, %53 : vector<8x32xf32>
      %55 = arith.mulf %54, %54 : vector<8x32xf32>
      %cst_30 = arith.constant dense<0.000000e+00> : vector<8xf32>
      %56 = vector.multi_reduction <add>, %55, %cst_30 [1] : vector<8x32xf32> to vector<8xf32>
      %57 = vector.shape_cast %56 : vector<8xf32> to vector<8x1xf32>
      %cst_31 = arith.constant 3.200000e+01 : f32
      %58 = vector.broadcast %cst_31 : f32 to vector<8x1xf32>
      %59 = arith.divf %57, %58 : vector<8x1xf32>
      %60 = vector.broadcast %52 : vector<8x1xf32> to vector<8x32xf32>
      %61 = arith.subf %48, %60 : vector<8x32xf32>
      %cst_32 = arith.constant 9.99999996E-13 : f32
      %62 = vector.broadcast %cst_32 : f32 to vector<8x1xf32>
      %63 = arith.addf %59, %62 : vector<8x1xf32>
      %64 = math.rsqrt %63 : vector<8x1xf32>
      %65 = vector.broadcast %64 : vector<8x1xf32> to vector<8x32xf32>
      %66 = arith.mulf %61, %65 : vector<8x32xf32>
      %c0_33 = arith.constant 0 : index
      %c0_34 = arith.constant 0 : index
      %67 = vector.load %arg7[%c0_33, %c0_34] : memref<1x32xf32, #tpu.memory_space<vmem>>, vector<1x32xf32>
      %68 = vector.shape_cast %67 : vector<1x32xf32> to vector<32xf32>
      %69 = vector.shape_cast %68 : vector<32xf32> to vector<1x32xf32>
      %70 = vector.broadcast %69 : vector<1x32xf32> to vector<8x32xf32>
      %71 = arith.mulf %66, %70 : vector<8x32xf32>
      %c0_35 = arith.constant 0 : index
      %c0_36 = arith.constant 0 : index
      %72 = vector.load %arg8[%c0_35, %c0_36] : memref<1x32xf32, #tpu.memory_space<vmem>>, vector<1x32xf32>
      %73 = vector.shape_cast %72 : vector<1x32xf32> to vector<32xf32>
      %74 = vector.shape_cast %73 : vector<32xf32> to vector<1x32xf32>
      %75 = vector.broadcast %74 : vector<1x32xf32> to vector<8x32xf32>
      %76 = arith.addf %71, %75 : vector<8x32xf32>
      %c0_37 = arith.constant 0 : index
      %c0_38 = arith.constant 0 : index
      %c0_39 = arith.constant 0 : index
      %77 = vector.load %arg9[%c0_37, %c0_38, %c0_39] : memref<1x8x32xf32, #tpu.memory_space<vmem>>, vector<1x8x32xf32>
      %78 = vector.shape_cast %77 : vector<1x8x32xf32> to vector<8x32xf32>
      %79 = vector.shape_cast %76 : vector<8x32xf32> to vector<1x8x32xf32>
      tpu.vector_store %arg9[%c0_37, %c0_38, %c0_39], %79 {strides = array<i32>} : memref<1x8x32xf32, #tpu.memory_space<vmem>>, vector<1x8x32xf32>,
    } else {
    }
    return
  }
  func.func @transform_0(%arg0: i32, %arg1: i32) -> (i32, i32, i32) {
    %c0_i32 = arith.constant 0 : i32
    %c0_i32_0 = arith.constant 0 : i32
    %c0_i32_1 = arith.constant 0 : i32
    return %arg0, %c0_i32, %c0_i32_0 : i32, i32, i32
  }
  func.func @transform_1(%arg0: i32, %arg1: i32) -> (i32, i32, i32) {
    %c0_i32 = arith.constant 0 : i32
    %c0_i32_0 = arith.constant 0 : i32
    %c0_i32_1 = arith.constant 0 : i32
    return %arg1, %c0_i32, %c0_i32_0 : i32, i32, i32
  }
  func.func @transform_2(%arg0: i32, %arg1: i32) -> (i32, i32, i32) {
    %c0_i32 = arith.constant 0 : i32
    %c0_i32_0 = arith.constant 0 : i32
    %c0_i32_1 = arith.constant 0 : i32
    return %arg1, %c0_i32, %c0_i32_0 : i32, i32, i32
  }
  func.func @transform_3(%arg0: i32, %arg1: i32) -> (i32, i32, i32) {
    %c0_i32 = arith.constant 0 : i32
    %c0_i32_0 = arith.constant 0 : i32
    %c0_i32_1 = arith.constant 0 : i32
    return %arg1, %c0_i32, %c0_i32_0 : i32, i32, i32
  }
  func.func @transform_4(%arg0: i32, %arg1: i32) -> (i32, i32) {
    %c0_i32 = arith.constant 0 : i32
    %c0_i32_0 = arith.constant 0 : i32
    %c0_i32_1 = arith.constant 0 : i32
    return %c0_i32, %c0_i32_0 : i32, i32
  }
  func.func @transform_5(%arg0: i32, %arg1: i32) -> (i32, i32) {
    %c0_i32 = arith.constant 0 : i32
    %c0_i32_0 = arith.constant 0 : i32
    %c0_i32_1 = arith.constant 0 : i32
    return %c0_i32, %c0_i32_0 : i32, i32
  }
  func.func @transform_6(%arg0: i32, %arg1: i32) -> (i32, i32) {
    %c0_i32 = arith.constant 0 : i32
    %c0_i32_0 = arith.constant 0 : i32
    %c0_i32_1 = arith.constant 0 : i32
    return %c0_i32, %c0_i32_0 : i32, i32
  }
  func.func @transform_7(%arg0: i32, %arg1: i32) -> (i32, i32, i32) {
    %c0_i32 = arith.constant 0 : i32
    %c0_i32_0 = arith.constant 0 : i32
    %c0_i32_1 = arith.constant 0 : i32
    return %arg0, %c0_i32, %c0_i32_0 : i32, i32, i32
  }
}

</mosaic_0001>

<bundles_post_ra>
// kernel: tpu_custom_call.1
= control target key start
LH: loop header
LB: loop body
LE: loop exit
PB: predicated region body
PF: predicated region fallthrough
CT: control target
= control target key end

     0   :  { %s2035_s0 = inlined_call_operand.hbm [shape: f32[2,8,32], index: 0, kind: input, shape index: {}]   ;;  %s2036_s1 = inlined_call_operand.hbm [shape: bf16[4,32,24], index: 1, kind: input, shape index: {}]   ;;  %s2037_s2 = inlined_call_operand.hbm [shape: f32[4,1,24], index: 2, kind: input, shape index: {}]   ;;  %s2038_s3 = inlined_call_operand.hbm [shape: bf16[4,8,32], index: 3, kind: input, shape index: {}]   ;;  %s2039_s4 = inlined_call_operand.hbm [shape: f32[1,32], index: 4, kind: input, shape index: {}]   ;;  %s2040_s5 = inlined_call_operand.hbm [shape: f32[1,32], index: 5, kind: input, shape index: {}]   ;;  %s2041_s6 = inlined_call_operand.hbm [shape: f32[1,32], index: 6, kind: input, shape index: {}]   ;;  %s2042_s7 = inlined_call_operand.hbm [shape: f32[2,8,32], index: 7, kind: output, shape index: {}]  }
   0x1   :  { %2065 = sst [smem:[#allocation33_spill]] %s2035_s0 }
   0x2   :  { %2066 = sst [smem:[#allocation34_spill]] %s2036_s1 }
   0x3   :  { %2067 = sst [smem:[#allocation35_spill]] %s2039_s4 }
   0x4   :  { %2068 = sst [smem:[#allocation36_spill]] %s2040_s5 }
   0x5   :  { %2069 = sst [smem:[#allocation37_spill]] %s2041_s6 }
   0x6   :  { %2070 = sst [smem:[#allocation38_spill]] %s2042_s7 }
   0x7   :  { %12 = vsyncpa [#allocation5], 0 }
   0x8   :  { %14 = vsyncpa [#allocation5 + $0x1], 0 }
   0x9   :  { %15 = vsyncpa [#allocation8], 0 }
   0xa   :  { %17 = vsyncpa [#allocation8 + $0x1], 0 }
   0xb   :  { %18 = vsyncpa [#allocation11], 0 }
   0xc   :  { %20 = vsyncpa [#allocation11 + $0x1], 0 }
   0xd   :  { %21 = vsyncpa [#allocation14], 0 }
   0xe   :  { %22 = vsyncpa [#allocation6], 0 }
   0xf   :  { %24 = vsyncpa [#allocation6 + $0x1], 0  ;;  %s1562_s24 = smov 0   ;;  %s1564_s25 = smov 0  }
  0x10   :  { %s1566_s26 = smov 0   ;;  %s1568_s27 = smov 0  }
  0x11   :  { %s1570_s28 = smov 0   ;;  %s1572_s29 = smov 0  }
  0x12   :  { %s1574_s30 = smov 0   ;;  %s1576_s8 = smov 0  }
  0x13   :  { %s1578_s9 = smov 0   ;;  %s1580_s10 = smov 0  }
  0x14   :  { %s1582_s11 = smov 0  }
  0x15 LB: > { %2071 = sst [smem:[#allocation23_spill]] %s1469_s25  ;;  %s1616_s12 = sadd.s32 4294967295, %s1505_s11   ;;  %s1505_s11 = sphi %s1582_s11, %s30_s11   ;;  %s1501_s10 = sphi %s1580_s10, %s2127_s10   ;;  %s1497_s9 = sphi %s1578_s9, %s2133_s9   ;;  %s1493_s8 = sphi %s1576_s8, %s2125_s8   ;;  %s1489_s30 = sphi %s1574_s30, %s2132_s30   ;;  %s1485_s29 = sphi %s1572_s29, %s2124_s29   ;;  %s1481_s28 = sphi %s1570_s28, %s2131_s28   ;;  %s1477_s27 = sphi %s1568_s27, %s2130_s27   ;;  %s1473_s26 = sphi %s1566_s26, %s2129_s26   ;;  %s1469_s25 = sphi %s1564_s25, %s2128_s25   ;;  %s1465_s24 = sphi %s1562_s24, %s2122_s24  }
  0x16   : > { %2072 = sst [smem:[#allocation24_spill]] %s1485_s29  ;;  %p88_p0 = scmp.ne.s32.totalorder %s1469_s25, %s1465_s24 }
  0x17   : > { %2073 = sst [smem:[#allocation25_spill]] %s1489_s30  ;;  %p2044_p1 = scmp.eq.s32.totalorder %s1616_s12, 0 }
  0x18   : > { %2074 = sst [smem:[#allocation26_spill]] %s1493_s8  ;;  %p927_p2 = scmp.ge.s32.totalorder %s1505_s11, 1 }
  0x19   : > { %2075 = sst [smem:[#allocation27_spill]] %s1501_s10  ;;  %p240_p3 = scmp.lt.s32.totalorder %s1505_s11, 9 }
  0x1a   : > { %p1624_p4 = por %p88_p0, %p2044_p1  ;;  %s1507_s15 = smov [#allocation12]  }
  0x1b   : > { %p1628_p5 = pnand %p927_p2, %p240_p3  ;;  %s253_s16 = sshll.u32 %s1507_s15, 4  ;;  %s254_s16 = int_to_ptr.vmem [resolvable:$true] %s253_s16 }
  0x1c   : > { %s2076_s13 = scalar_select %p1624_p4, 1, 0 }
  0x1d   : > { %s2078_s14 = scalar_select %p1628_p5, 1, 0 }
  0x1e   : > { %2077 = sst [smem:[#allocation28_spill]] %s2076_s13  ;;  %p1022_p6 = pneg %p1628_p5 }
  0x1f   : > { %2079 = sst [smem:[#allocation29_spill]] %s2078_s14  ;;  %s1508_s17 = smov [#allocation13]  }
  0x20   : > { %s264_s18 = sshll.u32 %s1508_s17, 4  ;;  %p1636_p7 = pnand %p1022_p6, %p2044_p1  ;;  %s1640_s18 = int_to_ptr.vmem [resolvable:$true] %s264_s18 }
  0x21   : > { %s2081_s4 = sld [smem:[#allocation35_spill]] }
  0x22   : > { %s2080_s19 = scalar_select %p1636_p7, 1, 0 }
  0x23   : > { %p1650_p9 = pneg %p1636_p7 }
  0x25   : > { %s2082_s15 = scalar_select %p1650_p9, 1, 0 }
  0x27   : > { %s1163_s22 = scalar_lea.hbm %s2081_s4, 16 }
  0x28   : > { %p1164_p8 = scmp.ne.s32.totalorder %s2081_s4, %s1163_s22  ;;  %p1170_p12 = scmp.lt.u32.totalorder %s1163_s22, %s2081_s4 }
  0x2a   : > { %p1166_p10 = pnand %p1650_p9, %p1164_p8 }
  0x2c   : > { %p1167_p11 = pneg %p1166_p10 }
  0x2e   : > { %p1172_p13 = pnand %p1170_p12, %p1167_p11 }
  0x30   : > { %1175 = shalt.err (!%p1172_p13)
}
  0x31   : > { %s1176_s20 = scalar_lea.vmem %s254_s16, 16  ;;  %s1183_s21 = scalar_lea.vmem %s254_s16, 32 }
  0x32   : > { %p1177_p0 = scmp.ne.s32.totalorder %s254_s16, %s1176_s20  ;;  %p1184_p6 = scmp.lt.s32.totalorder %s254_s16, %s254_s16 }
  0x33   : > { %p1185_p1 = scmp.lt.s32.totalorder %s1183_s21, %s1176_s20 }
  0x34   : > { %p1179_p2 = pnand %p1177_p0, %p1650_p9 }
  0x35   : > { %p1186_p4 = por %p1185_p1, %p1184_p6 }
  0x36   : > { %p1180_p3 = pneg %p1179_p2 }
  0x38   : > { %p1187_p5 = pnand %p1186_p4, %p1180_p3 }
  0x3a   : > { %1190 = shalt.err (!%p1187_p5)
}
  0x3b   : > { %1025 = dma.hbm_to_vmem [thread:$0]  (!%p1636_p7), %s2081_s4, 16, %s254_s16, [#allocation11]  }
  0x3c   : > { %s2083_s5 = sld [smem:[#allocation36_spill]] }
  0x42   : > { %s1191_s17 = scalar_lea.hbm %s2083_s5, 16 }
  0x43   : > { %p1192_p8 = scmp.ne.s32.totalorder %s2083_s5, %s1191_s17  ;;  %p1198_p4 = scmp.lt.u32.totalorder %s1191_s17, %s2083_s5 }
  0x45   : > { %p1194_p10 = pnand %p1192_p8, %p1650_p9 }
  0x47   : > { %p1195_p1 = pneg %p1194_p10 }
  0x49   : > { %p1200_p5 = pnand %p1198_p4, %p1195_p1 }
  0x4b   : > { %1203 = shalt.err (!%p1200_p5)
}
  0x4c   : > { %s1204_s16 = scalar_lea.vmem %s1640_s18, 16  ;;  %s1211_s30 = scalar_lea.vmem %s1640_s18, 32 }
  0x4d   : > { %p1205_p11 = scmp.ne.s32.totalorder %s1640_s18, %s1204_s16  ;;  %p1212_p0 = scmp.lt.s32.totalorder %s1640_s18, %s1640_s18 }
  0x4e   : > { %p1213_p2 = scmp.lt.s32.totalorder %s1211_s30, %s1204_s16 }
  0x4f   : > { %p1207_p12 = pnand %p1205_p11, %p1650_p9 }
  0x50   : > { %p1214_p3 = por %p1213_p2, %p1212_p0 }
  0x51   : > { %p1208_p13 = pneg %p1207_p12 }
  0x53   : > { %p1215_p6 = pnand %p1214_p3, %p1208_p13 }
  0x55   : > { %1218 = shalt.err (!%p1215_p6)
}
  0x56   : > { %1028 = dma.hbm_to_vmem [thread:$0]  (!%p1636_p7), %s2083_s5, 16, %s1640_s18, [#allocation14]  }
  0x57   : > { %p2049_p8 = scmp.eq.s32.totalorder %s1505_s11, 0  ;;  %p82_p10 = scmp.ne.s32.totalorder %s1473_s26, %s1469_s25 }
  0x58   : > { %p2047_p1 = scmp.lt.s32.totalorder %s1505_s11, 8  ;;  %s2048_s7 = sand.u32 1, %s1505_s11  }
  0x59   : > { %s1697_s22 = sand.u32 1, %s1473_s26   ;;  %p84_p4 = por %p82_p10, %p2049_p8 }
  0x5a   : > { %s934_s17 = sshll.u32 %s1697_s22, 4  ;;  %s964_s20 = sshll.u32 %s1497_s9, 8 }
  0x5b   : > { %s2084_s1 = sld [smem:[#allocation34_spill]]  ;;  %s308_s18 = scalar_lea.vmem [#allocation7], %s934_s17 }
  0x5c   : > { %s315_s8 = sshll.u32 %s308_s18, 4  ;;  %p1710_p5 = pnand %p2047_p1, %p84_p4  ;;  %s1714_s8 = int_to_ptr.vmem [resolvable:$true] %s315_s8 }
  0x5d   : > { %s1718_s24 = scalar_lea.sflag [#allocation8], %s2048_s7 }
  0x5e   : > { %s2085_s23 = scalar_select %p1710_p5, 1, 0 }
  0x5f   : > { %p1724_p12 = pneg %p1710_p5 }
  0x61   : > { %s1706_s30 = scalar_lea.hbm %s2084_s1, %s964_s20  ;;  %s1224_s18 = scalar_lea.hbm %s2084_s1, 1024 }
  0x62   : > { %s1219_s21 = scalar_lea.hbm %s1706_s30, 256  ;;  %p1225_p2 = scmp.lt.u32.totalorder %s1706_s30, %s2084_s1 }
  0x63   : > { %p1220_p11 = scmp.ne.s32.totalorder %s1706_s30, %s1219_s21  ;;  %p1226_p3 = scmp.lt.u32.totalorder %s1224_s18, %s1219_s21 }
  0x64   : > { %p1228_p10 = scmp.lt.u32.totalorder %s1219_s21, %s1706_s30 }
  0x65   : > { %p1222_p13 = pnand %p1724_p12, %p1220_p11  ;;  %p1227_p6 = por %p1226_p3, %p1225_p2 }
  0x67   : > { %p1223_p0 = pneg %p1222_p13  ;;  %p1229_p4 = por %p1228_p10, %p1227_p6 }
  0x69   : > { %p1230_p1 = pnand %p1229_p4, %p1223_p0 }
  0x6b   : > { %1233 = shalt.err (!%p1230_p1)
}
  0x6c   : > { %s1234_s7 = scalar_lea.vmem %s1714_s8, 256  ;;  %s1509_s17 = smov [#allocation7]  }
  0x6d   : > { %p1235_p11 = scmp.ne.s32.totalorder %s1714_s8, %s1234_s7  ;;  %s1239_s16 = sshll.u32 %s1509_s17, 4  ;;  %s1240_s16 = int_to_ptr.vmem [resolvable:$false] %s1239_s16 }
  0x6e   : > { %s1241_s4 = scalar_lea.vmem %s1240_s16, 512  ;;  %p1242_p7 = scmp.lt.s32.totalorder %s1714_s8, %s1240_s16 }
  0x6f   : > { %p1237_p13 = pnand %p1235_p11, %p1724_p12  ;;  %p1243_p9 = scmp.lt.s32.totalorder %s1241_s4, %s1234_s7 }
  0x71   : > { %p1238_p8 = pneg %p1237_p13  ;;  %p1244_p2 = por %p1243_p9, %p1242_p7 }
  0x73   : > { %p1245_p3 = pnand %p1244_p2, %p1238_p8 }
  0x75   : > { %1248 = shalt.err (!%p1245_p3)
}
  0x76   : > { %s1510_s5 = smov 64   ;;  %s1511_s21 = smov 4  }
  0x77   : > { %1038 = dma.hbm_to_vmem [thread:$0]  (!%p1710_p5), %s1706_s30, 256, %s1714_s8, %s1718_s24, %s1510_s5, %s1510_s5, %s1511_s21  }
  0x78   : > { %s1512_s18 = smov [#allocation15]   ;;  %s2087_s6 = sld [smem:[#allocation37_spill]] }
  0x79   : > { %s275_s1 = sshll.u32 %s1512_s18, 4  ;;  %p2088_p9 = scmp.ne.s32.totalorder %s2082_s15, 0  ;;  %s276_s1 = int_to_ptr.vmem [resolvable:$true] %s275_s1 }
  0x7e   : > { %s1249_s16 = scalar_lea.hbm %s2087_s6, 16 }
  0x7f   : > { %p1250_p7 = scmp.ne.s32.totalorder %s2087_s6, %s1249_s16  ;;  %p1256_p0 = scmp.lt.u32.totalorder %s1249_s16, %s2087_s6 }
  0x81   : > { %p1252_p8 = pnand %p1250_p7, %p2088_p9 }
  0x83   : > { %p1253_p1 = pneg %p1252_p8 }
  0x85   : > { %p1258_p6 = pnand %p1256_p0, %p1253_p1 }
  0x87   : > { %1261 = shalt.err (!%p1258_p6)
}
  0x88   : > { %s1262_s30 = scalar_lea.vmem %s276_s1, 16  ;;  %s1269_s13 = scalar_lea.vmem %s276_s1, 32 }
  0x89   : > { %p1263_p10 = scmp.ne.s32.totalorder %s276_s1, %s1262_s30  ;;  %p1270_p13 = scmp.lt.s32.totalorder %s276_s1, %s276_s1 }
  0x8a   : > { %p1271_p2 = scmp.lt.s32.totalorder %s1269_s13, %s1262_s30 }
  0x8b   : > { %p1265_p4 = pnand %p1263_p10, %p2088_p9 }
  0x8c   : > { %p1272_p3 = por %p1271_p2, %p1270_p13 }
  0x8d   : > { %p1266_p11 = pneg %p1265_p4 }
  0x8f   : > { %p1273_p5 = pnand %p1272_p3, %p1266_p11 }
  0x91   : > { %1276 = shalt.err (!%p1273_p5)
}
  0x92   : > { %p2089_p7 = scmp.ne.s32.totalorder %s2080_s19, 0  ;;  %s926_s25 = sadd.s32 4294967294, %s1505_s11  }
  0x93   : > { %s39_s14 = sadd.s32 1, %s1497_s9  ;;  %s42_s19 = sadd.s32 1, %s1501_s10 }
  0x94   : > { %1031 = dma.hbm_to_vmem [thread:$0]  (!%p2089_p7), %s2087_s6, 16, %s276_s1, [#allocation14]  }
  0x95   : > { %p40_p5 = scmp.ge.s32.totalorder %s39_s14, 4  ;;  %s49_s15 = sadd.s32 1, %s1485_s29 }
  0x96   : > { %p56_p9 = scmp.ne.s32.totalorder %s1485_s29, %s1481_s28  ;;  %p62_p8 = scmp.ne.s32.totalorder %s1481_s28, %s1477_s27 }
  0x97   : > { %s2135_s14 = smov (%p40_p5, %s39_s14), 0  ;;  %s2137_s19 = smov (!%p40_p5, %s42_s19), %s1501_s10 }
  0x98   : > { %2090 = sst [smem:[#allocation30_spill]] %s2135_s14  ;;  %p2091_p1 = scmp.eq.s32.totalorder %s1505_s11, 0 }
  0x99   : > { %p2093_p6 = scmp.eq.s32.totalorder %s1616_s12, 0  ;;  %p44_p4 = scmp.ge.s32.totalorder %s2137_s19, 2 }
  0x9a   : > { %p1782_p0 = por %p2091_p1, %p56_p9  ;;  %s72_s18 = ssub.s32 %s1497_s9, %s2135_s14 }
  0x9b   : > { %p1791_p10 = por %p2093_p6, %p62_p8  ;;  %p73_p11 = scmp.eq.s32.totalorder %s72_s18, 0 }
  0x9c   : > { %p227_p13 = scmp.eq.s32.totalorder %s1616_s12, 7  ;;  %s2139_s19 = smov (%p44_p4, %s2137_s19), 0 }
  0x9d   : > { %s2094_s21 = scalar_select %p1791_p10, 1, 0 }
  0x9e   : > { %2095 = sst [smem:[#allocation31_spill]] %s2139_s19  ;;  %s2096_s17 = sadd.s32 1, %s1473_s26 }
  0x9f   : > { %s1803_s16 = scalar_select %p73_p11, %s1473_s26, %s2096_s17  }
  0xa0   : > { %s46_s7 = ssub.s32 %s1501_s10, %s2139_s19  ;;  %p1810_p2 = por %p227_p13, %p56_p9 }
  0xa1   : > { %p47_p3 = scmp.eq.s32.totalorder %s46_s7, 0  ;;  %p233_p7 = scmp.eq.s32.totalorder %s926_s25, 7 }
  0xa2   : > { %s2097_s4 = scalar_select %p1810_p2, 1, 0 }
  0xa3   : > { %s286_s30 = sand.u32 1, %s1485_s29   ;;  %s933_s13 = sshll.u32 %s1501_s10, 7 }
  0xa4   : > { %s1817_s8 = scalar_select %p47_p3, %s1485_s29, %s49_s15  }
  0xa5   : > { %p1822_p5 = por %p233_p7, %p62_p8  ;;  %s932_s18 = sshll.u32 %s286_s30, 3 }
  0xa6   : > { %2098 = sst [smem:[#allocation32_spill]] %s1817_s8  ;;  %s2100_s0 = sld [smem:[#allocation33_spill]] }
  0xa7   : > { %s2099_s5 = scalar_select %p1822_p5, 1, 0 }
  0xa8   : > { %p2101_p9 = scmp.lt.s32.totalorder %s1505_s11, 8  ;;  %s290_s15 = scalar_lea.vmem [#allocation4], %s932_s18 }
  0xa9   : > { %s297_s7 = sshll.u32 %s290_s15, 4  ;;  %s287_s14 = scalar_lea.sflag [#allocation5], %s286_s30  ;;  %s1839_s7 = int_to_ptr.vmem [resolvable:$true] %s297_s7 }
  0xaa   : > { %p1835_p1 = pnand %p2101_p9, %p1782_p0 }
  0xac   : > { %s1829_s19 = scalar_lea.hbm %s2100_s0, %s933_s13  ;;  %p1279_p6 = pneg %p1835_p1 }
  0xad   : > { %s1277_s6 = scalar_lea.hbm %s1829_s19, 128  ;;  %s1282_s17 = scalar_lea.hbm %s2100_s0, 256 }
  0xae   : > { %p1278_p8 = scmp.ne.s32.totalorder %s1829_s19, %s1277_s6  ;;  %p1283_p0 = scmp.lt.u32.totalorder %s1829_s19, %s2100_s0 }
  0xaf   : > { %p1284_p13 = scmp.lt.u32.totalorder %s1282_s17, %s1277_s6  ;;  %p1286_p7 = scmp.lt.u32.totalorder %s1277_s6, %s1829_s19 }
  0xb0   : > { %p1280_p4 = pnand %p1279_p6, %p1278_p8 }
  0xb1   : > { %p1285_p3 = por %p1284_p13, %p1283_p0 }
  0xb2   : > { %p1281_p11 = pneg %p1280_p4 }
  0xb3   : > { %p1287_p9 = por %p1286_p7, %p1285_p3 }
  0xb5   : > { %p1288_p5 = pnand %p1287_p9, %p1281_p11 }
  0xb7   : > { %1291 = shalt.err (!%p1288_p5)
}
  0xb8   : > { %s1292_s30 = scalar_lea.vmem %s1839_s7, 128  ;;  %s1513_s18 = smov [#allocation4]  }
  0xb9   : > { %p1293_p8 = scmp.ne.s32.totalorder %s1839_s7, %s1292_s30  ;;  %s1297_s15 = sshll.u32 %s1513_s18, 4  ;;  %s1298_s15 = int_to_ptr.vmem [resolvable:$false] %s1297_s15 }
  0xba   : > { %s1299_s10 = scalar_lea.vmem %s1298_s15, 256  ;;  %p1300_p10 = scmp.lt.s32.totalorder %s1839_s7, %s1298_s15 }
  0xbb   : > { %p1295_p4 = pnand %p1293_p8, %p1279_p6  ;;  %p1301_p0 = scmp.lt.s32.totalorder %s1299_s10, %s1292_s30 }
  0xbd   : > { %p1296_p2 = pneg %p1295_p4  ;;  %p1302_p13 = por %p1301_p0, %p1300_p10 }
  0xbf   : > { %p1303_p3 = pnand %p1302_p13, %p1296_p2 }
  0xc1   : > { %1306 = shalt.err (!%p1303_p3)
}
  0xc2   : > { %1035 = dma.hbm_to_vmem [thread:$0]  (!%p1835_p1), %s1829_s19, 128, %s1839_s7, %s287_s14  }
  0xc3   : > { %s937_s8 = sshll.u32 %s1497_s9, 4  ;;  %s328_s6 = scalar_lea.vmem [#allocation9], %s1697_s22 }
  0xc4   : > { %s335_s1 = sshll.u32 %s328_s6, 4  ;;  %s333_s18 = scalar_lea.hbm %s2037_s2, %s937_s8  ;;  %s336_s1 = int_to_ptr.vmem [resolvable:$true] %s335_s1 }
  0xc5   : > { %s1307_s30 = scalar_lea.hbm %s333_s18, 16  ;;  %s1312_s10 = scalar_lea.hbm %s2037_s2, 64 }
  0xc6   : > { %p1308_p10 = scmp.ne.s32.totalorder %s333_s18, %s1307_s30  ;;  %p1313_p1 = scmp.lt.u32.totalorder %s333_s18, %s2037_s2 }
  0xc7   : > { %p1314_p6 = scmp.lt.u32.totalorder %s1312_s10, %s1307_s30  ;;  %p1316_p7 = scmp.lt.u32.totalorder %s1307_s30, %s333_s18 }
  0xc8   : > { %p1310_p2 = pnand %p1308_p10, %p1724_p12 }
  0xc9   : > { %p1315_p11 = por %p1314_p6, %p1313_p1 }
  0xca   : > { %p1311_p5 = pneg %p1310_p2 }
  0xcb   : > { %p1317_p9 = por %p1316_p7, %p1315_p11 }
  0xcd   : > { %p1318_p8 = pnand %p1317_p9, %p1311_p5 }
  0xcf   : > { %1321 = shalt.err (!%p1318_p8)
}
  0xd0   : > { %s1322_s14 = scalar_lea.vmem %s336_s1, 16  ;;  %s1514_s19 = smov [#allocation9]  }
  0xd1   : > { %p1323_p4 = scmp.ne.s32.totalorder %s336_s1, %s1322_s14  ;;  %s1327_s7 = sshll.u32 %s1514_s19, 4  ;;  %s1328_s7 = int_to_ptr.vmem [resolvable:$false] %s1327_s7 }
  0xd2   : > { %s1329_s8 = scalar_lea.vmem %s1328_s7, 32  ;;  %p1330_p3 = scmp.lt.s32.totalorder %s336_s1, %s1328_s7 }
  0xd3   : > { %p1325_p0 = pnand %p1323_p4, %p1724_p12  ;;  %p1331_p10 = scmp.lt.s32.totalorder %s1329_s8, %s1322_s14 }
  0xd5   : > { %p1326_p13 = pneg %p1325_p0  ;;  %p1332_p2 = por %p1331_p10, %p1330_p3 }
  0xd7   : > { %p1333_p1 = pnand %p1332_p2, %p1326_p13 }
  0xd9   : > { %1336 = shalt.err (!%p1333_p1)
}
  0xda   : > { %p2103_p6 = scmp.ne.s32.totalorder %s2085_s23, 0  ;;  %s938_s0 = sshll.u32 %s1697_s22, 2 }
  0xdb   : > { %s939_s29 = sshll.u32 %s1497_s9, 6  ;;  %s346_s30 = scalar_lea.vmem [#allocation10], %s938_s0 }
  0xdc   : > { %1041 = dma.hbm_to_vmem [thread:$0]  (!%p2103_p6), %s333_s18, 16, %s336_s1, %s1718_s24  }
  0xdd   : > { %s1889_s17 = scalar_lea.hbm %s2038_s3, %s939_s29  ;;  %s353_s25 = sshll.u32 %s346_s30, 4  ;;  %s354_s25 = int_to_ptr.vmem [resolvable:$true] %s353_s25 }
  0xde   : > { %s2104_s15 = sand.u32 1, %s1505_s11   ;;  %s1337_s14 = scalar_lea.hbm %s1889_s17, 64 }
  0xdf   : > { %s343_s10 = scalar_lea.sflag [#allocation11], %s2104_s15  ;;  %p1338_p5 = scmp.ne.s32.totalorder %s1889_s17, %s1337_s14 }
  0xe0   : > { %s1342_s1 = scalar_lea.hbm %s2038_s3, 256  ;;  %p1343_p9 = scmp.lt.u32.totalorder %s1889_s17, %s2038_s3 }
  0xe1   : > { %p1340_p11 = pnand %p1338_p5, %p1724_p12  ;;  %p1344_p8 = scmp.lt.u32.totalorder %s1342_s1, %s1337_s14 }
  0xe2   : > { %p1346_p0 = scmp.lt.u32.totalorder %s1337_s14, %s1889_s17 }
  0xe3   : > { %p1341_p7 = pneg %p1340_p11  ;;  %p1345_p4 = por %p1344_p8, %p1343_p9 }
  0xe5   : > { %p1347_p13 = por %p1346_p0, %p1345_p4 }
  0xe7   : > { %p1348_p3 = pnand %p1347_p13, %p1341_p7 }
  0xe9   : > { %1351 = shalt.err (!%p1348_p3)
}
  0xea   : > { %s1352_s7 = scalar_lea.vmem %s354_s25, 64  ;;  %s1515_s8 = smov [#allocation10]  }
  0xeb   : > { %p1353_p10 = scmp.ne.s32.totalorder %s354_s25, %s1352_s7  ;;  %s1357_s0 = sshll.u32 %s1515_s8, 4  ;;  %s1358_s0 = int_to_ptr.vmem [resolvable:$false] %s1357_s0 }
  0xec   : > { %s1359_s29 = scalar_lea.vmem %s1358_s0, 128  ;;  %p1360_p5 = scmp.lt.s32.totalorder %s354_s25, %s1358_s0 }
  0xed   : > { %p1355_p2 = pnand %p1353_p10, %p1724_p12  ;;  %p1361_p11 = scmp.lt.s32.totalorder %s1359_s29, %s1352_s7 }
  0xef   : > { %p1356_p1 = pneg %p1355_p2  ;;  %p1362_p6 = por %p1361_p11, %p1360_p5 }
  0xf1   : > { %p1363_p8 = pnand %p1362_p6, %p1356_p1 }
  0xf3   : > { %1366 = shalt.err (!%p1363_p8)
}
  0xf4   : > { %p2105_p9 = scmp.ne.s32.totalorder %s2085_s23, 0  ;;  %s2106_s6 = sld [smem:[#allocation29_spill]] }
  0xf6   : > { %1044 = dma.hbm_to_vmem [thread:$0]  (!%p2105_p9), %s1889_s17, 64, %s354_s25, %s343_s10  }
  0xfa   : > { %p2107_p7 = scmp.ne.s32.totalorder %s2106_s6, 0 }
  0xfb   : > { %s1913_s20 = sand.u32 (!%p2107_p7), 1, %s1481_s28   ;;  %p2108_p12 = scmp.ne.s32.totalorder (!%p2107_p7), %s2094_s21, 0 }
  0xfc   : > { %362 = sbr.rel (%p2107_p7) target bundleno = 1952 (0x7a0), region = 48  ;;  %s941_s13 = sshll.u32 (!%p2107_p7), %s1913_s20, 3 }
  0xfd   : > { %s365_s30 = scalar_lea.sflag (!%p2107_p7), [#allocation5], %s1913_s20  ;;  %s1917_s15 = scalar_lea.vmem (!%p2107_p7), [#allocation4], %s941_s13 }
 0x103   : > { %1440 = dma.done.wait (%p2108_p12), %s365_s30, 128  }
 0x104   : > { %1442 = vsyncadd (%p2108_p12), %s365_s30, 4294967168  ;;  %s2109_s23 = sld [smem:[#allocation23_spill]]  ;;  %s373_s25 = sand.u32 1, %s1616_s12  }
 0x105   : > { %s2110_s17 = sld [smem:[#allocation28_spill]]  ;;  %s374_s24 = scalar_lea.sflag [#allocation8], %s373_s25 }
 0x10a   : > { %s1925_s10 = sand.u32 1, %s2109_s23  }
 0x10b   : > { %s942_s14 = sshll.u32 %s1925_s10, 4  ;;  %p2111_p6 = scmp.ne.s32.totalorder %s2110_s17, 0 }
 0x10c   : > { %s377_s22 = scalar_lea.vmem [#allocation7], %s942_s14 }
 0x10d   : > { %1444 = dma.done.wait (%p2111_p6), %s374_s24, 272  }
 0x10e   : > { %1446 = vsyncadd (%p2111_p6), %s374_s24, 4294967024  ;;  %s943_s21 = sshll.u32 %s1925_s10, 2  ;;  %s385_s1 = scalar_lea.vmem [#allocation9], %s1925_s10 }
 0x10f   : > { %s391_s18 = scalar_lea.sflag [#allocation11], %s373_s25  ;;  %s1934_s19 = scalar_lea.vmem [#allocation10], %s943_s21 }
 0x110   : > { %1448 = dma.done.wait (%p2111_p6), %s391_s18, 64  }
 0x111   : > { %1450 = vsyncadd (%p2111_p6), %s391_s18, 4294967232  ;;  %p2112_p4 = scmp.eq.s32.totalorder %s1616_s12, 0 }
 0x113   : > { %1452 = dma.done.wait (%p2112_p4), [#allocation11], 16   ;;  %p2113_p0 = pmov %p2112_p4 }
 0x115   : > { %1454 = vsyncadd (%p2113_p0), [#allocation11], 4294967280  ;;  %p2114_p13 = pmov %p2113_p0 }
 0x116   : > { %p2115_p3 = pmov %p2113_p0 }
 0x117   : > { %1456 = dma.done.wait (%p2114_p13), [#allocation14], 32  }
 0x118   : > { %1458 = vsyncadd (%p2115_p3), [#allocation14], 4294967264  ;;  %s1948_s7 = scalar_lea.vmem [#allocation16], %s941_s13  ;;  %s2116_s8 = sld [smem:[#allocation25_spill]] }
 0x11e   : > { %p948_p10 = scmp.ne.s32.totalorder %s2116_s8, 0 }
 0x11f   : > { %vm456_vm0 = vcmask (!%p948_p10), 261120   ;;  %v458_v0 = vld [vmem:[%s1917_s15] sm:$0xff] (!%p948_p10)  ;;  %vm460_vm1 = vcmask (!%p948_p10), 257024   ;;  %v1516_v1 = vmov (!%p948_p10), 0.0  }
 0x120   : > { %455 = sbr.rel (%p948_p10) target bundleno = 295 (0x127), region = 80  ;;  %457 = vst.msk [vmem:[#allocation2] sm:$0xff] (!%p948_p10), %vm456_vm0, %v1516_v1  ;;  %v459_v2 = vpack.c.bf16 (!%p948_p10), %v458_v0, %v458_v0 }
 0x122   : > { %461 = vst.msk [vmem:[#allocation3] sm:$0xf] (!%p948_p10), %vm460_vm1, %v459_v2 }
 0x127 PF: > { %v1155_v3 = vld [vmem:[%s377_s22] sm:$0xff]   ;;  %v1517_v4 = vmov 0.0   ;;  %v1156_v5 = vld [vmem:[%s377_s22 + $0x8] sm:$0xff]   ;;  %vm1518_vm2 = vmmov 0   ;;  %vm486_vm3 = vcmask 261120   ;;  %s1519_s12 = smov 120  }
 0x128   : > { %974 = vmatprep.subr.bf16.mxu0 %v1517_v4  ;;  %982 = vmatprep.subr.bf16.mxu1 %v1517_v4  ;;  %v949_v7 = vld [vmem:[%s385_s1] ss:$0 sm:$0xff]  ;;  %vm534_vm4 = vcmask 64512   ;;  %s1520_s0 = smov 112   ;;  %vm598_vm5 = vcmask 1043456   ;;  %s2117_s29 = sld [smem:[#allocation25_spill]] }
 0x129   : > { %975 = vmatpush3.bf16.msra.mxu0 %v1155_v3  ;;  %978 = vmatprep.mubr.msk.bf16.mxu0 %vm1518_vm2, %v1517_v4  ;;  %v462_v6 = vld [vmem:[#allocation3] sm:$0xf]  ;;  %v644_v26 = vld [vmem:[%s1934_s19] sm:$0xf] }
 0x12a   : > { %976 = vmatprep.subr.bf16.mxu0 %v1517_v4  ;;  %984 = vmatprep.mubr.msk.bf16.mxu1 %vm1518_vm2, %v1517_v4  ;;  %v649_v27 = vsel %vm598_vm5, %v644_v26, 0  ;;  %v642_v39 = vld [vmem:[#allocation2] sm:$0xff] }
 0x12d   : > { %977 = vmatpush3.bf16.msra.mxu0 %v1156_v5 }
 0x12e   : > { %988 = vmatprep.subr.bf16.mxu0 %v1517_v4  ;;  %p956_p2 = scmp.ne.s32.totalorder %s2117_s29, 3 }
 0x12f   : > { %v957_v46 = vld [vmem:[#allocation12] ss:$0 sm:$0xff] (!%p956_p2)  ;;  %v706_v47 = vld [vmem:[%s1917_s15] sm:$0xff] (!%p956_p2)  ;;  %v958_v60 = vld [vmem:[#allocation13] ss:$0 sm:$0xff] (!%p956_p2) }
 0x130   : > { %979 = vmatmul.mubr.msk.bf16.vlgmr.msra.gmra.mrb[0].mxu0 %vm486_vm3, %v462_v6  ;;  %v959_v62 = vld [vmem:[#allocation15] ss:$0 sm:$0xff] (!%p956_p2) }
 0x131   : > { %990 = vmatprep.mubr.msk.bf16.mxu0 %vm1518_vm2, %v1517_v4 }
 0x203   : > { %v524_v8 = vpop.f32.mrb[0].mxu0 }
 0x204   : > { %v525_v9 = vadd.f32 %v949_v7, %v524_v8  ;;  %v980_v10 = vpop.f32.mrb[1].mxu0 }
 0x205   : > { %v527_v11 = vpop.f32.mrb[2].mxu0 }
 0x206   : > { %v530_v12 = vpack.c.bf16 %v525_v9, %v525_v9  ;;  %v981_v13 = vpop.f32.mrb[3].mxu0 }
 0x208   : > { %532 = vrot.lane.b32.xlu0 %v530_v12, %s1519_s12 }
 0x27a   : > { %v533_v14 = vpop.permute.xlu0 %532 }
 0x27b   : > { %v539_v15 = vsel %vm534_vm4, %v533_v14, 0 }
 0x27c   : > { %983 = vmatpush3.bf16.xpose.msra.mxu1 %v539_v15 }
 0x27d   : > { %994 = vmatprep.subr.bf16.mxu1 %v1517_v4 }
 0x283   : > { %985 = vmatmul.mubr.msk.bf16.vlgmr.msra.gmra.mrb[0].mxu1 %vm534_vm4, %v530_v12 }
 0x284   : > { %996 = vmatprep.mubr.msk.bf16.mxu1 %vm1518_vm2, %v1517_v4  ;;  %995 = vmatpush3.bf16.msra.mxu1 %v649_v27 }
 0x356   : > { %v575_v16 = vpop.f32.mrb[0].mxu1 }
 0x357   : > { %v986_v17 = vpop.f32.mrb[1].mxu1  ;;  %v581_v18 = vsel %vm534_vm4, %v575_v16, -inf }
 0x358   : > { %582 = vmax.xlane.f32.xlu0 %v581_v18  ;;  %v578_v19 = vpop.f32.mrb[2].mxu1 }
 0x359   : > { %v987_v20 = vpop.f32.mrb[3].mxu1 }
 0x3e5   : > { %v583_v21 = vpop.xlane.xlu0 %582 }
 0x3e6   : > { %v584_v22 = vsub.f32 %v575_v16, %v583_v21 }
 0x3e8   : > { %v585_v23 = vmul.f32 1.442695, %v584_v22 }
 0x3ea   : > { %1157 = vpow2.f32 %v585_v23 }
 0x3f4   : > { %v1158_v24 = vpop.eup %1157 }
 0x3f5   : > { %v587_v25 = vsel %vm534_vm4, %v1158_v24, 0.0 }
 0x3f6   : > { %588 = vadd.xlane.f32.xlu1 %v587_v25 }
 0x407   : > { %593 = vrot.lane.b32.xlu1 %v530_v12, %s1520_s0 }
 0x483   : > { %v589_v28 = vpop.xlane.xlu1 %588 }
 0x484   : > { %1159 = vrcp.f32 %v589_v28 }
 0x487   : > { %v594_v29 = vpop.permute.xlu1 %593 }
 0x488   : > { %v600_v30 = vsel %vm598_vm5, %v594_v29, 0 }
 0x489   : > { %989 = vmatpush3.bf16.msra.mxu0 %v600_v30 }
 0x48e   : > { %v1160_v31 = vpop.eup %1159 }
 0x48f   : > { %v591_v32 = vmul.f32 %v1160_v31, %v1158_v24 }
 0x491   : > { %v592_v33 = vpack.c.bf16 %v591_v32, %v591_v32 }
 0x493   : > { %991 = vmatmul.mubr.msk.bf16.vlgmr.msra.gmra.mrb[4].mxu0 %vm534_vm4, %v592_v33 }
 0x566   : > { %v636_v34 = vpop.f32.mrb[4].mxu0 }
 0x567   : > { %v643_v35 = vpack.c.bf16 %v636_v34, %v636_v34  ;;  %v992_v36 = vpop.f32.mrb[5].mxu0 }
 0x568   : > { %v639_v37 = vpop.f32.mrb[6].mxu0 }
 0x569   : > { %v993_v38 = vpop.f32.mrb[7].mxu0  ;;  %997 = vmatmul.mubr.msk.bf16.vlgmr.msra.gmra.mrb[4].mxu1 %vm534_vm4, %v643_v35 }
 0x639   : > { %696 = sbr.rel (%p956_p2) target bundleno = 1925 (0x785), region = 84 }
 0x63c   : > { %v685_v40 = vpop.f32.mrb[4].mxu1 }
 0x63d   : > { %v691_v41 = vadd.f32 %v685_v40, %v642_v39  ;;  %v998_v42 = vpop.f32.mrb[5].mxu1 }
 0x63e   : > { %v688_v43 = vpop.f32.mrb[6].mxu1 }
 0x63f   : > { %692 = vst.msk [vmem:[#allocation2] sm:$0xff] %vm486_vm3, %v691_v41  ;;  %v999_v44 = vpop.f32.mrb[7].mxu1 }
 0x646   : > { %v697_v45 = vld [vmem:[#allocation2] sm:$0xff] }
 0x647   : > { %v705_v48 = vadd.f32 %v957_v46, %v697_v45 }
 0x649   : > { %v707_v49 = vadd.f32 %v706_v47, %v705_v48 }
 0x64b   : > { %v708_v50 = vsel %vm486_vm3, %v707_v49, 0.0 }
 0x64c   : > { %709 = vadd.xlane.f32.xlu0 %v708_v50 }
 0x6d9   : > { %v710_v51 = vpop.xlane.xlu0 %709 }
 0x6da   : > { %v712_v52 = vmul.f32 0.03125, %v710_v51 }
 0x6dc   : > { %v713_v53 = vsub.f32 %v707_v49, %v712_v52 }
 0x6de   : > { %v714_v54 = vmul.f32 %v713_v53, %v713_v53 }
 0x6e0   : > { %v715_v55 = vsel %vm486_vm3, %v714_v54, 0.0 }
 0x6e1   : > { %716 = vadd.xlane.f32.xlu0 %v715_v55 }
 0x76e   : > { %v717_v56 = vpop.xlane.xlu0 %716 }
 0x76f   : > { %v718_v57 = vmul.f32 0.03125, %v717_v56 }
 0x771   : > { %v719_v58 = vadd.f32 1e-12, %v718_v57 }
 0x773   : > { %1161 = vrsqrt.f32 %v719_v58 }
 0x77d   : > { %v1162_v59 = vpop.eup %1161 }
 0x77e   : > { %v721_v61 = vmul.f32 %v1162_v59, %v713_v53 }
 0x780   : > { %v729_v63 = vmul.f32 %v958_v60, %v721_v61 }
 0x782   : > { %v737_v0 = vadd.f32 %v959_v62, %v729_v63 }
 0x784   : > { %738 = vst.msk [vmem:[%s1948_s7] sm:$0xff] %vm486_vm3, %v737_v0 }
 0x785 PF: > { %s2118_s6 = sld [smem:[#allocation26_spill]]  ;;  %s753_s25 = sshll.u32 %s1948_s7, 4  ;;  %s754_s25 = int_to_ptr.vmem [resolvable:$true] %s753_s25 }
 0x786   : > { %s2119_s23 = sld [smem:[#allocation38_spill]]  ;;  %s740_s10 = scalar_lea.sflag [#allocation6], %s1913_s20 }
 0x787   : > { %s1367_s14 = scalar_lea.vmem %s754_s25, 128  ;;  %p2120_p5 = scmp.ne.s32.totalorder %s2097_s4, 0 }
 0x788   : > { %p1368_p1 = scmp.ne.s32.totalorder %s754_s25, %s1367_s14  ;;  %s1521_s24 = smov [#allocation16]  }
 0x789   : > { %s1371_s22 = sshll.u32 %s1521_s24, 4  ;;  %s1372_s22 = int_to_ptr.vmem [resolvable:$false] %s1371_s22 }
 0x78a   : > { %p1369_p11 = pnand %p1368_p1, %p2120_p5  ;;  %s1373_s21 = scalar_lea.vmem %s1372_s22, 256 }
 0x78b   : > { %s961_s13 = sshll.u32 %s2118_s6, 7  ;;  %p1374_p9 = scmp.lt.s32.totalorder %s754_s25, %s1372_s22 }
 0x78c   : > { %s1977_s17 = scalar_lea.hbm %s2119_s23, %s961_s13  ;;  %p1370_p8 = pneg %p1369_p11 }
 0x78d   : > { %p1375_p7 = scmp.lt.s32.totalorder %s1373_s21, %s1367_s14 }
 0x78f   : > { %p1376_p12 = por %p1375_p7, %p1374_p9 }
 0x791   : > { %p1377_p6 = pnand %p1376_p12, %p1370_p8 }
 0x793   : > { %1380 = shalt.err (!%p1377_p6)
}
 0x794   : > { %s1381_s20 = scalar_lea.hbm %s1977_s17, 128  ;;  %s1385_s19 = scalar_lea.hbm %s2119_s23, 256 }
 0x795   : > { %p1382_p4 = scmp.ne.s32.totalorder %s1977_s17, %s1381_s20  ;;  %p1386_p3 = scmp.lt.u32.totalorder %s1977_s17, %s2119_s23 }
 0x796   : > { %p1387_p10 = scmp.lt.u32.totalorder %s1385_s19, %s1381_s20  ;;  %p1389_p1 = scmp.lt.u32.totalorder %s1381_s20, %s1977_s17 }
 0x797   : > { %p1383_p0 = pnand %p1382_p4, %p2120_p5 }
 0x798   : > { %p1388_p2 = por %p1387_p10, %p1386_p3 }
 0x799   : > { %p1384_p13 = pneg %p1383_p0 }
 0x79a   : > { %p1390_p11 = por %p1389_p1, %p1388_p2 }
 0x79c   : > { %p1391_p8 = pnand %p1390_p11, %p1384_p13 }
 0x79e   : > { %1394 = shalt.err (!%p1391_p8)
}
 0x79f   : > { %1020 = dma.vmem_to_hbm [thread:$0]  (%p2120_p5), %s754_s25, 128, %s1977_s17, %s740_s10  }
 0x7a0 PF: > { %p1056_p9 = scmp.ge.s32.totalorder %s1505_s11, 2  ;;  %s765_s12 = sand.u32 1, %s1477_s27  }
 0x7a1   : > { %p2121_p7 = scmp.ne.s32.totalorder %s2099_s5, 0  ;;  %s766_s0 = scalar_lea.sflag [#allocation6], %s765_s12 }
 0x7a3   : > { %p1046_p12 = pnand %p1056_p9, %p2121_p7 }
 0x7a5   : > { %1460 = dma.done.wait (!%p1046_p12), %s766_s0, 128  }
 0x7a6   : > { %1462 = vsyncadd (!%p1046_p12), %s766_s0, 4294967168  ;;  %s30_s11 = sadd.s32 1, %s1505_s11   ;;  %s2122_s24 = sld [smem:[#allocation23_spill]] }
 0x7a7   : > { %p27_p6 = scmp.ge.s32.totalorder %s30_s11, 10   ;;  %s2123_s4 = sld [smem:[#allocation24_spill]] }
 0x7a8   : > { %s2124_s29 = sld [smem:[#allocation32_spill]]  ;;  %s2125_s8 = sld [smem:[#allocation27_spill]] }
 0x7a9   : > { %s2126_s6 = sld [smem:[#allocation30_spill]]  ;;  %s2127_s10 = sld [smem:[#allocation31_spill]] }
 0x7aa   : > { %s2128_s25 = smov %s1473_s26  ;;  %s2129_s26 = smov %s1803_s16 }
 0x7ab   : > { %s2130_s27 = smov %s1481_s28  ;;  %s2132_s30 = smov %s1497_s9 }
 0x7ac   :  { %29 = sbr.rel (!%p27_p6) target bundleno = 21 (0x15), region = 150 }
 0x7ad   : > { %s2131_s28 = smov %s2123_s4 }
 0x7af   : > { %s2133_s9 = smov %s2126_s6 }
 0x7b3   :  { %771 = vsyncpa [#allocation5], 1 }
 0x7b4   :  { %773 = vsyncpa [#allocation5 + $0x1], 1 }
 0x7b5   :  { %774 = vsyncpa [#allocation8], 1 }
 0x7b6   :  { %776 = vsyncpa [#allocation8 + $0x1], 1 }
 0x7b7   :  { %777 = vsyncpa [#allocation11], 1 }
 0x7b8   :  { %779 = vsyncpa [#allocation11 + $0x1], 1 }
 0x7b9   :  { %780 = vsyncpa [#allocation14], 1 }
 0x7ba   :  { %781 = vsyncpa [#allocation6], 1 }
 0x7bb   :  { %783 = vsyncpa [#allocation6 + $0x1], 1 }

</bundles_post_ra>
